<compile_context>
chip_gen: v7x
topology: tpu7x:2x2x1
jax: 0.10.0
libtpu: 0.0.40
codegen_flags: <defaults>
</compile_context>

<pallas_src>
import math
import functools

import jax
import jax.numpy as jnp
from jax import lax
from jax.experimental import pallas as pl
from jax.experimental.pallas import tpu as pltpu


# ---------------------------------------------------------------------------
# Tile selection
# ---------------------------------------------------------------------------
def _pick_tile(dim, max_tile, granule):
    """Largest tile <= max_tile that is a multiple of `granule` and divides `dim`.

    Falls back to the full dimension (always a legal block size) when the dim is
    small or has no aligned divisor.
    """
    if dim <= max_tile:
        return dim
    t = (max_tile // granule) * granule
    while t >= granule:
        if dim % t == 0:
            return t
        t -= granule
    return dim


# ---------------------------------------------------------------------------
# Kernels (K-tiled matmul with f32 accumulator)
# ---------------------------------------------------------------------------
def _matmul_bias_kernel(x_ref, w_ref, b_ref, o_ref, acc_ref, *, dnums):
    k = pl.program_id(2)

    @pl.when(k == 0)
    def _():
        acc_ref[...] = jnp.zeros_like(acc_ref)

    acc_ref[...] += lax.dot_general(
        x_ref[...], w_ref[...], dimension_numbers=dnums,
        preferred_element_type=jnp.float32)

    @pl.when(k == pl.num_programs(2) - 1)
    def _():
        o_ref[...] = (acc_ref[...] + b_ref[...].astype(jnp.float32)).astype(o_ref.dtype)


def _matmul_kernel(x_ref, w_ref, o_ref, acc_ref, *, dnums):
    k = pl.program_id(2)

    @pl.when(k == 0)
    def _():
        acc_ref[...] = jnp.zeros_like(acc_ref)

    acc_ref[...] += lax.dot_general(
        x_ref[...], w_ref[...], dimension_numbers=dnums,
        preferred_element_type=jnp.float32)

    @pl.when(k == pl.num_programs(2) - 1)
    def _():
        o_ref[...] = acc_ref[...].astype(o_ref.dtype)


# ---------------------------------------------------------------------------
# Wrapper
# ---------------------------------------------------------------------------
def _tied_matmul(x, w, bias=None, *, transpose_w, tm_max=256, tn_max=256, tk_max=2048):
    """Compute x @ W^T (+ bias) if transpose_w else x @ W, with W in its stored layout."""
    M, K = x.shape
    if transpose_w:
        # W is (N, K): contract x's axis 1 with W's axis 1 (NT matmul on the MXU).
        N, Kw = w.shape
        dnums = (((1,), (1,)), ((), ()))
    else:
        # W is (K, N): plain NN matmul.
        Kw, N = w.shape
        dnums = (((1,), (0,)), ((), ()))
    assert K == Kw, f"contraction mismatch: {K} vs {Kw}"

    tm = _pick_tile(M, tm_max, 8)
    tn = _pick_tile(N, tn_max, 128)
    tk = _pick_tile(K, tk_max, 128)
    grid = (M // tm, N // tn, K // tk)

    x_spec = pl.BlockSpec((tm, tk), lambda i, j, k: (i, k))
    if transpose_w:
        w_spec = pl.BlockSpec((tn, tk), lambda i, j, k: (j, k))
    else:
        w_spec = pl.BlockSpec((tk, tn), lambda i, j, k: (k, j))
    out_spec = pl.BlockSpec((tm, tn), lambda i, j, k: (i, j))
    out_shape = jax.ShapeDtypeStruct((M, N), x.dtype)
    scratch_shapes = [pltpu.VMEM((tm, tn), jnp.float32)]

    itemsize = jnp.dtype(x.dtype).itemsize
    bytes_accessed = (M * K + N * K + M * N + (N if bias is not None else 0)) * itemsize
    cost = pl.CostEstimate(flops=2 * M * N * K, transcendentals=0,
                           bytes_accessed=bytes_accessed)
    cparams = pltpu.CompilerParams(
        dimension_semantics=("parallel", "parallel", "arbitrary"),
        vmem_limit_bytes=32 * 1024 * 1024,
    )

    if bias is not None:
        b2d = bias.reshape(1, N)
        b_spec = pl.BlockSpec((1, tn), lambda i, j, k: (0, j))
        kernel = functools.partial(_matmul_bias_kernel, dnums=dnums)
        in_specs = [x_spec, w_spec, b_spec]
        args = (x, w, b2d)
    else:
        kernel = functools.partial(_matmul_kernel, dnums=dnums)
        in_specs = [x_spec, w_spec]
        args = (x, w)

    return pl.pallas_call(
        kernel,
        out_shape=out_shape,
        grid_spec=pltpu.PrefetchScalarGridSpec(
            num_scalar_prefetch=0,
            grid=grid,
            in_specs=in_specs,
            out_specs=out_spec,
            scratch_shapes=scratch_shapes,
        ),
        compiler_params=cparams,
        cost_estimate=cost,
    )(*args)


class TiedLinearPallas:
    """JAX/Pallas equivalent of the PyTorch TiedLinear module."""

    def __init__(self, input_size, hidden_size, bias=True, key=None, dtype=jnp.float32):
        self.input_size = input_size
        self.hidden_size = hidden_size
        if key is None:
            key = jax.random.PRNGKey(0)
        k_w, k_b = jax.random.split(key)

        # kaiming_uniform_(a=sqrt(5)) on a (hidden, input) matrix:
        # bound = 1/sqrt(fan_in), fan_in = input_size. Bias: same bound.
        w_bound = 1.0 / math.sqrt(input_size)
        self.weight = jax.random.uniform(
            k_w, (hidden_size, input_size), dtype=dtype, minval=-w_bound, maxval=w_bound
        )
        if bias:
            b_bound = 1.0 / math.sqrt(input_size)
            self.bias = jax.random.uniform(
                k_b, (hidden_size,), dtype=dtype, minval=-b_bound, maxval=b_bound
            )
        else:
            self.bias = None

    def forward(self, x):
        # y = x @ W^T + b  -> (batch, hidden_size); W kept in stored layout (NT in-kernel).
        return _tied_matmul(x, self.weight, self.bias, transpose_w=True)

    def forward_transpose(self, x):
        # y = x @ W, no bias -> (batch, input_size)
        return _tied_matmul(x, self.weight, None, transpose_w=False)


# ---------------------------------------------------------------------------
# Demo / correctness check
# ---------------------------------------------------------------------------
if __name__ == "__main__":
    batch = 16
    input_size = 64
    hidden_size = 256

    key = jax.random.PRNGKey(0)
    k_mod, k_x = jax.random.split(key)

    mod = TiedLinearPallas(input_size, hidden_size, bias=True, key=k_mod)
    x = jax.random.normal(k_x, (batch, input_size), dtype=jnp.float32)

    # encoder pass
    y_enc = jax.block_until_ready(mod.forward(x))
    # decoder (tied / transposed) pass
    y_dec = jax.block_until_ready(mod.forward_transpose(y_enc))

    # pure-JAX reference
    y_enc_ref = x @ mod.weight.T + mod.bias
    y_dec_ref = y_enc_ref @ mod.weight

    assert y_enc.shape == (batch, hidden_size)
    assert y_dec.shape == (batch, input_size)
    assert jnp.allclose(y_enc, y_enc_ref, atol=1e-5, rtol=1e-5)
    assert jnp.allclose(y_dec, y_dec_ref, atol=1e-4, rtol=1e-4)

    print("KERNEL_OK")
</pallas_src>

<mosaic_0001>
module attributes {stable_mosaic.version = 11 : i64} {
  func.func @_matmul_bias_kernel(%arg0: i32, %arg1: i32, %arg2: i32, %arg3: memref<16x64xf32, #tpu.memory_space<vmem>>, %arg4: memref<256x64xf32, #tpu.memory_space<vmem>>, %arg5: memref<1x256xf32, #tpu.memory_space<vmem>>, %arg6: memref<16x256xf32, #tpu.memory_space<vmem>>, %arg7: memref<16x256xf32, #tpu.memory_space<vmem>>) attributes {dimension_semantics = [#tpu.dimension_semantics<parallel>, #tpu.dimension_semantics<parallel>, #tpu.dimension_semantics<arbitrary>], iteration_bounds = array<i64: 1, 1, 1>, scalar_prefetch = 0 : i64, scratch_operands = 1 : i64, tpu.core_type = #tpu.core_type<tc>, window_params = [{transform_indices = @transform_0, window_bounds = array<i64: 16, 64>}, {transform_indices = @transform_1, window_bounds = array<i64: 256, 64>}, {transform_indices = @transform_2, window_bounds = array<i64: 1, 256>}, {transform_indices = @transform_3, window_bounds = array<i64: 16, 256>}]} {
    %c0_i32 = arith.constant 0 : i32
    %0 = arith.cmpi eq, %arg2, %c0_i32 : i32
    %1 = arith.extui %0 : i1 to i32
    %c0_i32_0 = arith.constant 0 : i32
    %2 = arith.cmpi ne, %1, %c0_i32_0 : i32
    scf.if %2 {
      %cst_10 = arith.constant 0.000000e+00 : f32
      %12 = vector.broadcast %cst_10 : f32 to vector<16x256xf32>
      %c0_11 = arith.constant 0 : index
      %c0_12 = arith.constant 0 : index
      %13 = vector.load %arg7[%c0_11, %c0_12] : memref<16x256xf32, #tpu.memory_space<vmem>>, vector<16x256xf32>
      tpu.vector_store %arg7[%c0_11, %c0_12], %12 {strides = array<i32>} : memref<16x256xf32, #tpu.memory_space<vmem>>, vector<16x256xf32>,
    } else {
    }
    %c0 = arith.constant 0 : index
    %c0_1 = arith.constant 0 : index
    %3 = vector.load %arg7[%c0, %c0_1] : memref<16x256xf32, #tpu.memory_space<vmem>>, vector<16x256xf32>
    %c0_2 = arith.constant 0 : index
    %c0_3 = arith.constant 0 : index
    %4 = vector.load %arg3[%c0_2, %c0_3] : memref<16x64xf32, #tpu.memory_space<vmem>>, vector<16x64xf32>
    %c0_4 = arith.constant 0 : index
    %c0_5 = arith.constant 0 : index
    %5 = vector.load %arg4[%c0_4, %c0_5] : memref<256x64xf32, #tpu.memory_space<vmem>>, vector<256x64xf32>
    %cst = arith.constant dense<0.000000e+00> : vector<16x256xf32>
    %6 = tpu.matmul %4, %5, %cst {dimension_numbers = #tpu.dot_dimension_numbers<[1], [1], [0], [0], [0, 0, 1, 0], [], []>} : vector<16x64xf32>, vector<256x64xf32>, vector<16x256xf32> -> vector<16x256xf32>
    %7 = arith.addf %3, %6 : vector<16x256xf32>
    %c0_6 = arith.constant 0 : index
    %c0_7 = arith.constant 0 : index
    %8 = vector.load %arg7[%c0_6, %c0_7] : memref<16x256xf32, #tpu.memory_space<vmem>>, vector<16x256xf32>
    tpu.vector_store %arg7[%c0_6, %c0_7], %7 {strides = array<i32>} : memref<16x256xf32, #tpu.memory_space<vmem>>, vector<16x256xf32>,
    %c0_i32_8 = arith.constant 0 : i32
    %9 = arith.cmpi eq, %arg2, %c0_i32_8 : i32
    %10 = arith.extui %9 : i1 to i32
    %c0_i32_9 = arith.constant 0 : i32
    %11 = arith.cmpi ne, %10, %c0_i32_9 : i32
    scf.if %11 {
      %c0_10 = arith.constant 0 : index
      %c0_11 = arith.constant 0 : index
      %12 = vector.load %arg7[%c0_10, %c0_11] : memref<16x256xf32, #tpu.memory_space<vmem>>, vector<16x256xf32>
      %c0_12 = arith.constant 0 : index
      %c0_13 = arith.constant 0 : index
      %13 = vector.load %arg5[%c0_12, %c0_13] : memref<1x256xf32, #tpu.memory_space<vmem>>, vector<1x256xf32>
      %14 = vector.broadcast %13 : vector<1x256xf32> to vector<16x256xf32>
      %15 = arith.addf %12, %14 : vector<16x256xf32>
      %c0_14 = arith.constant 0 : index
      %c0_15 = arith.constant 0 : index
      %16 = vector.load %arg6[%c0_14, %c0_15] : memref<16x256xf32, #tpu.memory_space<vmem>>, vector<16x256xf32>
      tpu.vector_store %arg6[%c0_14, %c0_15], %15 {strides = array<i32>} : memref<16x256xf32, #tpu.memory_space<vmem>>, vector<16x256xf32>,
    } else {
    }
    return
  }
  func.func @transform_0(%arg0: i32, %arg1: i32, %arg2: i32) -> (i32, i32) {
    %c0_i32 = arith.constant 0 : i32
    return %arg0, %arg2 : i32, i32
  }
  func.func @transform_1(%arg0: i32, %arg1: i32, %arg2: i32) -> (i32, i32) {
    %c0_i32 = arith.constant 0 : i32
    return %arg1, %arg2 : i32, i32
  }
  func.func @transform_2(%arg0: i32, %arg1: i32, %arg2: i32) -> (i32, i32) {
    %c0_i32 = arith.constant 0 : i32
    %c0_i32_0 = arith.constant 0 : i32
    return %c0_i32, %arg1 : i32, i32
  }
  func.func @transform_3(%arg0: i32, %arg1: i32, %arg2: i32) -> (i32, i32) {
    %c0_i32 = arith.constant 0 : i32
    return %arg0, %arg1 : i32, i32
  }
}

</mosaic_0001>

<bundles_post_ra>
// kernel: tpu_custom_call.1
= control target key start
LH: loop header
LB: loop body
LE: loop exit
PB: predicated region body
PF: predicated region fallthrough
CT: control target
= control target key end

     0   :  { %vm61_vm0 = vcmask 523264   ;;  %s675_s0 = inlined_call_operand.vmem [shape: f32[16,64], index: 0, kind: input, shape index: {}]   ;;  %s676_s1 = inlined_call_operand.vmem [shape: f32[256,64], index: 1, kind: input, shape index: {}]   ;;  %s677_s2 = inlined_call_operand.vmem [shape: f32[1,256], index: 2, kind: input, shape index: {}]   ;;  %s678_s3 = inlined_call_operand.hbm [shape: f32[16,256], index: 3, kind: output, shape index: {}]  }
   0x1   :  { %v45_v0 = vld [vmem:[%s676_s1 + $0x80] sm:$0xff]  ;;  %v46_v1 = vld [vmem:[%s676_s1 + $0x88] sm:$0xff]  ;;  %vm487_vm1 = vmpackc.low %vm61_vm0, %vm61_vm0 }
   0x2   :  { %v29_v2 = vld [vmem:[%s676_s1] sm:$0xff]  ;;  %v362_v3 = vpack.c.bf16 %v46_v1, %v45_v0  ;;  %v30_v5 = vld [vmem:[%s676_s1 + $0x8] sm:$0xff]  ;;  %v47_v6 = vld [vmem:[%s676_s1 + $0x90] sm:$0xff] }
   0x3   :  { %v365_v7 = vpack.c.bf16 %v30_v5, %v29_v2  ;;  %v48_v8 = vld [vmem:[%s676_s1 + $0x98] sm:$0xff]  ;;  %v31_v10 = vld [vmem:[%s676_s1 + $0x10] sm:$0xff]  ;;  %v49_v12 = vld [vmem:[%s676_s1 + $0xa0] sm:$0xff] }
   0x4   :  { %364 = vmatprep.subr.msk.bf16.mxu0 %vm487_vm1, %v362_v3  ;;  %410 = vmatprep.subr.msk.bf16.mxu1 %vm487_vm1, %v362_v3  ;;  %v368_v9 = vpack.c.bf16 %v48_v8, %v47_v6  ;;  %v32_v11 = vld [vmem:[%s676_s1 + $0x18] sm:$0xff]  ;;  %v50_v13 = vld [vmem:[%s676_s1 + $0xa8] sm:$0xff]  ;;  %v527_v16 = vld [vmem:[%s675_s0] sm:$0xff] }
   0x5   :  { %367 = vmatpush3.bf16.xpose.msk.msra.mxu0 %vm487_vm1, %v365_v7  ;;  %418 = vmatpush3.bf16.xpose.msk.msra.mxu1 %vm487_vm1, %v365_v7  ;;  %v371_v14 = vpack.c.bf16 %v32_v11, %v31_v10  ;;  %v374_v15 = vpack.c.bf16 %v50_v13, %v49_v12  ;;  %v532_v17 = vld [vmem:[%s675_s0 + $0x8] sm:$0xff] }
   0x6   :  { %370 = vmatprep.subr.msk.bf16.mxu0 %vm487_vm1, %v368_v9  ;;  %411 = vmatprep.subr.msk.bf16.mxu1 %vm487_vm1, %v368_v9 }
   0x7   :  { %8 = vsyncpa [#allocation4], 0  ;;  %v33_v18 = vld [vmem:[%s676_s1 + $0x20] sm:$0xff]  ;;  %v34_v19 = vld [vmem:[%s676_s1 + $0x28] sm:$0xff]  ;;  %358 = vmatprep.mubr.msk.f32.mxu0 %vm61_vm0, %v527_v16  ;;  %360 = vmatprep.mubr.msk.f32.mxu1 %vm61_vm0, %v532_v17  ;;  %v258_v51 = vlaneseq }
   0x8   :  { %v51_v20 = vld [vmem:[%s676_s1 + $0xb0] sm:$0xff]  ;;  %v52_v21 = vld [vmem:[%s676_s1 + $0xb8] sm:$0xff]  ;;  %v377_v22 = vpack.c.bf16 %v34_v19, %v33_v18  ;;  %v53_v26 = vld [vmem:[%s676_s1 + $0xc0] sm:$0xff] }
   0x9   :  { %v380_v23 = vpack.c.bf16 %v52_v21, %v51_v20  ;;  %v35_v24 = vld [vmem:[%s676_s1 + $0x30] sm:$0xff]  ;;  %v36_v25 = vld [vmem:[%s676_s1 + $0x38] sm:$0xff]  ;;  %v54_v27 = vld [vmem:[%s676_s1 + $0xc8] sm:$0xff]  ;;  %v259_v52 = vshrl.u32 %v258_v51, 7 }
   0xa   :  { %v383_v28 = vpack.c.bf16 %v36_v25, %v35_v24  ;;  %v386_v29 = vpack.c.bf16 %v54_v27, %v53_v26  ;;  %v37_v30 = vld [vmem:[%s676_s1 + $0x40] sm:$0xff]  ;;  %v38_v31 = vld [vmem:[%s676_s1 + $0x48] sm:$0xff]  ;;  %v55_v32 = vld [vmem:[%s676_s1 + $0xd0] sm:$0xff] }
   0xb   :  { %v56_v33 = vld [vmem:[%s676_s1 + $0xd8] sm:$0xff]  ;;  %v389_v34 = vpack.c.bf16 %v38_v31, %v37_v30  ;;  %v39_v36 = vld [vmem:[%s676_s1 + $0x50] sm:$0xff]  ;;  %v57_v38 = vld [vmem:[%s676_s1 + $0xe0] sm:$0xff]  ;;  %v260_v53 = vsub.s32 0, %v259_v52  ;;  %v264_v55 = vsub.s32 1, %v259_v52 }
   0xc   :  { %v392_v35 = vpack.c.bf16 %v56_v33, %v55_v32  ;;  %v40_v37 = vld [vmem:[%s676_s1 + $0x58] sm:$0xff]  ;;  %v58_v39 = vld [vmem:[%s676_s1 + $0xe8] sm:$0xff]  ;;  %v41_v42 = vld [vmem:[%s676_s1 + $0x60] sm:$0xff] }
   0xd   :  { %373 = vmatpush3.bf16.xpose.msk.msra.mxu0 %vm487_vm1, %v371_v14  ;;  %419 = vmatpush3.bf16.xpose.msk.msra.mxu1 %vm487_vm1, %v371_v14  ;;  %v395_v40 = vpack.c.bf16 %v40_v37, %v39_v36  ;;  %v398_v41 = vpack.c.bf16 %v58_v39, %v57_v38  ;;  %v42_v43 = vld [vmem:[%s676_s1 + $0x68] sm:$0xff]  ;;  %v59_v44 = vld [vmem:[%s676_s1 + $0xf0] sm:$0xff]  ;;  %v60_v45 = vld [vmem:[%s676_s1 + $0xf8] sm:$0xff] }
   0xe   :  { %376 = vmatprep.subr.msk.bf16.mxu0 %vm487_vm1, %v374_v15  ;;  %412 = vmatprep.subr.msk.bf16.mxu1 %vm487_vm1, %v374_v15  ;;  %v401_v46 = vpack.c.bf16 %v42_v43, %v41_v42  ;;  %v404_v47 = vpack.c.bf16 %v60_v45, %v59_v44  ;;  %v43_v48 = vld [vmem:[%s676_s1 + $0x70] sm:$0xff]  ;;  %v44_v49 = vld [vmem:[%s676_s1 + $0x78] sm:$0xff]  ;;  %v256_v54 = vld [vmem:[%s677_s2] sm:$0x3]  ;;  %s453_s1 = smov [#allocation3]  }
   0xf   :  { %v407_v50 = vpack.c.bf16 %v44_v49, %v43_v48  ;;  %v261_v56 = vrot.slane %v256_v54, %v260_v53  ;;  %v265_v57 = vrot.slane %v256_v54, %v264_v55  ;;  %s281_s26 = sshll.u32 %s453_s1, 4  ;;  %s282_s26 = int_to_ptr.vmem [resolvable:$true] %s281_s26 }
  0x10   :  { %s429_s27 = scalar_lea.vmem %s282_s26, 512  ;;  %p434_p1 = scmp.lt.s32.totalorder %s282_s26, %s282_s26 }
  0x11   :  { %p430_p0 = scmp.ne.s32.totalorder %s282_s26, %s429_s27  ;;  %p435_p2 = scmp.lt.s32.totalorder %s429_s27, %s429_s27 }
  0x13   :  { %p436_p3 = por %p435_p2, %p434_p1 }
  0x15   :  { %379 = vmatpush3.bf16.xpose.msk.msra.mxu0 %vm487_vm1, %v377_v22  ;;  %420 = vmatpush3.bf16.xpose.msk.msra.mxu1 %vm487_vm1, %v377_v22  ;;  %p437_p4 = pnand %p436_p3, %p430_p0 }
  0x16   :  { %382 = vmatprep.subr.msk.bf16.mxu0 %vm487_vm1, %v380_v23  ;;  %413 = vmatprep.subr.msk.bf16.mxu1 %vm487_vm1, %v380_v23 }
  0x1d   :  { %385 = vmatpush3.bf16.xpose.msk.msra.mxu0 %vm487_vm1, %v383_v28  ;;  %421 = vmatpush3.bf16.xpose.msk.msra.mxu1 %vm487_vm1, %v383_v28 }
  0x1e   :  { %388 = vmatprep.subr.msk.bf16.mxu0 %vm487_vm1, %v386_v29  ;;  %414 = vmatprep.subr.msk.bf16.mxu1 %vm487_vm1, %v386_v29 }
  0x25   :  { %391 = vmatpush3.bf16.xpose.msk.msra.mxu0 %vm487_vm1, %v389_v34  ;;  %422 = vmatpush3.bf16.xpose.msk.msra.mxu1 %vm487_vm1, %v389_v34 }
  0x26   :  { %394 = vmatprep.subr.msk.bf16.mxu0 %vm487_vm1, %v392_v35  ;;  %415 = vmatprep.subr.msk.bf16.mxu1 %vm487_vm1, %v392_v35 }
  0x2d   :  { %397 = vmatpush3.bf16.xpose.msk.msra.mxu0 %vm487_vm1, %v395_v40  ;;  %423 = vmatpush3.bf16.xpose.msk.msra.mxu1 %vm487_vm1, %v395_v40 }
  0x2e   :  { %400 = vmatprep.subr.msk.bf16.mxu0 %vm487_vm1, %v398_v41  ;;  %416 = vmatprep.subr.msk.bf16.mxu1 %vm487_vm1, %v398_v41 }
  0x35   :  { %403 = vmatpush3.bf16.xpose.msk.msra.mxu0 %vm487_vm1, %v401_v46  ;;  %424 = vmatpush3.bf16.xpose.msk.msra.mxu1 %vm487_vm1, %v401_v46 }
  0x36   :  { %406 = vmatprep.subr.msk.bf16.mxu0 %vm487_vm1, %v404_v47  ;;  %417 = vmatprep.subr.msk.bf16.mxu1 %vm487_vm1, %v404_v47 }
  0x3d   :  { %409 = vmatpush3.bf16.xpose.msk.msra.mxu0 %vm487_vm1, %v407_v50  ;;  %425 = vmatpush3.bf16.xpose.msk.msra.mxu1 %vm487_vm1, %v407_v50 }
  0x44   :  { %359 = vmatmul.mubr.msk.f32.vlgmr.msra.gmra.mrb[0].mxu0 %vm61_vm0, %v527_v16  ;;  %361 = vmatmul.mubr.msk.f32.vlgmr.msra.gmra.mrb[0].mxu1 %vm61_vm0, %v532_v17 }
 0x117   :  { %v230_v58 = vpop.f32.mrb[0].mxu0  ;;  %v236_v59 = vpop.f32.mrb[0].mxu1 }
 0x118   :  { %v268_v60 = vadd.f32 %v261_v56, %v230_v58  ;;  %v270_v61 = vadd.f32 %v261_v56, %v236_v59  ;;  %v232_v62 = vpop.f32.mrb[1].mxu0  ;;  %v238_v63 = vpop.f32.mrb[1].mxu1 }
 0x119   :  { %v269_v0 = vadd.f32 %v265_v57, %v232_v62  ;;  %v271_v1 = vadd.f32 %v265_v57, %v238_v63 }
 0x11a   :  { %272 = vst [vmem:[#allocation3] sm:$0xff] %v268_v60  ;;  %274 = vst [vmem:[#allocation3 + $0x10] sm:$0xff] %v270_v61 }
 0x11b   :  { %273 = vst [vmem:[#allocation3 + $0x8] sm:$0xff] %v269_v0  ;;  %275 = vst [vmem:[#allocation3 + $0x18] sm:$0xff] %v271_v1 }
 0x11c   :  { %440 = shalt.err (!%p437_p4)
}
 0x11d   :  { %s441_s29 = scalar_lea.hbm %s678_s3, 512 }
 0x11e   :  { %p442_p5 = scmp.ne.s32.totalorder %s678_s3, %s441_s29  ;;  %p445_p6 = scmp.lt.u32.totalorder %s441_s29, %s678_s3 }
 0x120   :  { %p447_p7 = pnand %p445_p6, %p442_p5 }
 0x122   :  { %450 = shalt.err (!%p447_p7)
}
 0x123   :  { %s454_s7 = smov 256   ;;  %s455_s8 = smov 16  }
 0x124   :  { %287 = dma.vmem_to_hbm [thread:$0]  %s282_s26, 512, %s678_s3, [#allocation4], %s454_s7, %s454_s7, %s455_s8  }
 0x125   :  { %451 = dma.done.wait [#allocation4], 512  }
 0x126   :  { %452 = vsyncadd [#allocation4], 4294966784 }
 0x127   :  { %291 = vsyncpa [#allocation4], 1 }

</bundles_post_ra>
